<compile_context>
chip_gen: v7x
topology: tpu7x:2x2x1
jax: 0.10.0
libtpu: 0.0.40
codegen_flags: <defaults>
</compile_context>

<pallas_src>
import functools

import jax
import jax.numpy as jnp
from jax.experimental import pallas as pl
from jax.experimental.pallas import tpu as pltpu

HIDDEN = 64
LANE = 128


def _cdiv(a, b):
    return -(-a // b)


def _round_up(x, m):
    return _cdiv(x, m) * m


def critic_kernel(s_ref, a_ref, w1s_ref, w1a_ref, b1_ref,
                  w2_ref, b2_ref, w3_ref, b3_ref, o_ref):
    # Feature-major: batch on the 128-lane axis.
    #   s_ref [state_dim, TB] bf16, a_ref [action_dim, TB] bf16
    #   w1s   [64, state_dim] bf16, w1a   [64, action_dim] bf16, w2 [64, 64] bf16
    #   b1, b2, w3 [64, 1] f32 (resident), b3 [1, 1] f32 in SMEM.
    # Layer 1 (fused concat): h1 = W1_s @ s + W1_a @ a + b1  -> [64, TB]
    h1 = (jnp.dot(w1s_ref[...], s_ref[...], preferred_element_type=jnp.float32)
          + jnp.dot(w1a_ref[...], a_ref[...], preferred_element_type=jnp.float32)
          + b1_ref[...])
    h1 = jnp.maximum(h1, 0.0)

    # Layer 2: h2 = W2 @ h1 + b2 -> [64, TB]   (bf16 MXU inputs, f32 accumulate)
    h2 = jnp.dot(w2_ref[...], h1.astype(jnp.bfloat16),
                 preferred_element_type=jnp.float32) + b2_ref[...]
    h2 = jnp.maximum(h2, 0.0)

    # Layer 3 (64 -> 1): VPU multiply + sublane reduction; lane-dense [1, TB] store.
    q = jnp.sum(h2 * w3_ref[...], axis=0, keepdims=True) + b3_ref[0, 0]
    o_ref[...] = q.astype(o_ref.dtype)


def critic_forward(state, action, params, *, block_b: int = 8192):
    """state: [B, state_dim], action: [B, action_dim] -> q: [B, 1] (float32)."""
    w1s, w1a, b1, w2, b2, w3, b3 = params
    B, state_dim = state.shape
    action_dim = action.shape[1]
    D = state_dim + action_dim

    # Feature-major, bf16 streamed activations (layout plumbing in the wrapper).
    s_t = state.astype(jnp.bfloat16).T          # [state_dim, B]
    a_t = action.astype(jnp.bfloat16).T         # [action_dim, B]

    # Tiling: pad batch only to a multiple of 128 lanes, then pick TB (multiple
    # of 128) so padding never exceeds one sub-tile; prefer >=2 grid steps when
    # the batch allows (engages v7x's second TensorCore; negligible elsewhere).
    Bp0 = _round_up(B, LANE)
    tb_cap = max(LANE, _round_up(min(block_b, Bp0), LANE))
    n_tiles = _cdiv(Bp0, tb_cap)
    if n_tiles == 1 and Bp0 >= 2 * LANE:
        n_tiles = 2
    TB = _round_up(_cdiv(Bp0, n_tiles), LANE)
    Bp = n_tiles * TB
    if Bp != B:
        s_t = jnp.pad(s_t, ((0, 0), (0, Bp - B)))
        a_t = jnp.pad(a_t, ((0, 0), (0, Bp - B)))

    # Activations stream across the batch grid; weights/biases stay resident.
    act_spec = lambda feat: pl.BlockSpec((feat, TB), lambda i: (0, i))
    res_spec = lambda shape: pl.BlockSpec(shape, lambda i: (0, 0))

    cost = pl.CostEstimate(
        flops=2 * Bp * (D * HIDDEN + HIDDEN * HIDDEN + HIDDEN),
        transcendentals=0,
        bytes_accessed=(2 * Bp * D                      # bf16 activation streams
                        + 4 * Bp                        # f32 output
                        + 2 * (D * HIDDEN + HIDDEN * HIDDEN)   # bf16 weights
                        + 4 * (3 * HIDDEN + 1)),        # f32 biases + w3
    )

    q_t = pl.pallas_call(
        critic_kernel,
        out_shape=jax.ShapeDtypeStruct((1, Bp), jnp.float32),
        grid=(n_tiles,),
        in_specs=[
            act_spec(state_dim),                         # state^T  [state_dim, TB]
            act_spec(action_dim),                        # action^T [action_dim, TB]
            res_spec((HIDDEN, state_dim)),               # W1_s     [64, state_dim]
            res_spec((HIDDEN, action_dim)),              # W1_a     [64, action_dim]
            res_spec((HIDDEN, 1)),                       # b1       [64, 1]
            res_spec((HIDDEN, HIDDEN)),                  # W2       [64, 64]
            res_spec((HIDDEN, 1)),                       # b2       [64, 1]
            res_spec((HIDDEN, 1)),                       # W3 col   [64, 1]
            pl.BlockSpec(memory_space=pltpu.MemorySpace.SMEM),  # b3 scalar [1, 1]
        ],
        out_specs=pl.BlockSpec((1, TB), lambda i: (0, i)),
        compiler_params=pltpu.CompilerParams(
            dimension_semantics=("parallel",),           # shard batch tiles across TCs
        ),
        cost_estimate=cost,
    )(s_t, a_t,
      w1s.astype(jnp.bfloat16), w1a.astype(jnp.bfloat16), b1,
      w2.astype(jnp.bfloat16), b2, w3, b3)

    return q_t[0, :B].reshape(B, 1)


def xavier_uniform(key, fan_out, fan_in, dtype=jnp.float32):
    # torch.nn.init.xavier_uniform_ on a [fan_out, fan_in] weight (gain=1.0).
    limit = (6.0 / (fan_in + fan_out)) ** 0.5
    return jax.random.uniform(key, (fan_out, fan_in), dtype, -limit, limit)


def init_critic_params(key, state_dim, action_dim):
    in_dim = state_dim + action_dim
    kw1, kb1, kw2, kb2, kw3, kb3 = jax.random.split(key, 6)

    # init_weights applies xavier_uniform_ to Linear weights; biases keep
    # nn.Linear's default uniform(-1/sqrt(fan_in), 1/sqrt(fan_in)).
    w1 = xavier_uniform(kw1, HIDDEN, in_dim)                  # [64, in_dim] (torch layout)
    w1s, w1a = w1[:, :state_dim], w1[:, state_dim:]           # split for fused concat
    b1 = jax.random.uniform(kb1, (HIDDEN, 1), jnp.float32,
                            -1.0 / in_dim ** 0.5, 1.0 / in_dim ** 0.5)
    w2 = xavier_uniform(kw2, HIDDEN, HIDDEN)                  # [64, 64]
    b2 = jax.random.uniform(kb2, (HIDDEN, 1), jnp.float32,
                            -1.0 / HIDDEN ** 0.5, 1.0 / HIDDEN ** 0.5)
    w3 = xavier_uniform(kw3, 1, HIDDEN).reshape(HIDDEN, 1)    # [64, 1] column
    b3 = jax.random.uniform(kb3, (1, 1), jnp.float32,
                            -1.0 / HIDDEN ** 0.5, 1.0 / HIDDEN ** 0.5)
    return (w1s, w1a, b1, w2, b2, w3, b3)


def critic_ref(state, action, params):
    # Pure-JAX reference mirroring the kernel's bf16-input / f32-accumulate math.
    w1s, w1a, b1, w2, b2, w3, b3 = params
    up = lambda x: x.astype(jnp.bfloat16).astype(jnp.float32)
    s, a = up(state), up(action)
    h1 = jnp.maximum(s @ up(w1s).T + a @ up(w1a).T + b1.T, 0.0)
    h2 = jnp.maximum(up(h1) @ up(w2).T + b2.T, 0.0)
    return h2 @ w3 + b3


if __name__ == "__main__":
    state_dim, action_dim, batch = 16, 8, 37   # non-multiple-of-128 batch exercises padding
    key = jax.random.PRNGKey(0)
    ks, ka, kp = jax.random.split(key, 3)

    state = jax.random.normal(ks, (batch, state_dim), jnp.float32)
    action = jax.random.normal(ka, (batch, action_dim), jnp.float32)
    params = init_critic_params(kp, state_dim, action_dim)

    fwd = jax.jit(functools.partial(critic_forward, block_b=8192))
    q = jax.block_until_ready(fwd(state, action, params))

    q_ref = critic_ref(state, action, params)
    assert q.shape == (batch, 1), q.shape
    max_err = float(jnp.max(jnp.abs(q - q_ref)))
    assert jnp.allclose(q, q_ref, atol=2e-2, rtol=2e-2), f"mismatch vs reference: {max_err}"

    print("KERNEL_OK")
</pallas_src>

<mosaic_0001>
module attributes {stable_mosaic.version = 11 : i64} {
  func.func @critic_kernel(%arg0: i32, %arg1: memref<16x128xbf16, #tpu.memory_space<vmem>>, %arg2: memref<8x128xbf16, #tpu.memory_space<vmem>>, %arg3: memref<64x16xbf16, #tpu.memory_space<vmem>>, %arg4: memref<64x8xbf16, #tpu.memory_space<vmem>>, %arg5: memref<64x1xf32, #tpu.memory_space<vmem>>, %arg6: memref<64x64xbf16, #tpu.memory_space<vmem>>, %arg7: memref<64x1xf32, #tpu.memory_space<vmem>>, %arg8: memref<64x1xf32, #tpu.memory_space<vmem>>, %arg9: memref<1x1xf32, #tpu.memory_space<smem>>, %arg10: memref<1x128xf32, #tpu.memory_space<vmem>>) attributes {dimension_semantics = [#tpu.dimension_semantics<parallel>], iteration_bounds = array<i64: 1>, scalar_prefetch = 0 : i64, scratch_operands = 0 : i64, tpu.core_type = #tpu.core_type<tc>, window_params = [{transform_indices = @transform_0, window_bounds = array<i64: 16, 128>}, {transform_indices = @transform_1, window_bounds = array<i64: 8, 128>}, {pipeline_mode = #tpu.pipeline_mode<synchronous>, transform_indices = @transform_2, window_bounds = array<i64: 64, 16>}, {pipeline_mode = #tpu.pipeline_mode<synchronous>, transform_indices = @transform_3, window_bounds = array<i64: 64, 8>}, {pipeline_mode = #tpu.pipeline_mode<synchronous>, transform_indices = @transform_4, window_bounds = array<i64: 64, 1>}, {pipeline_mode = #tpu.pipeline_mode<synchronous>, transform_indices = @transform_5, window_bounds = array<i64: 64, 64>}, {pipeline_mode = #tpu.pipeline_mode<synchronous>, transform_indices = @transform_6, window_bounds = array<i64: 64, 1>}, {pipeline_mode = #tpu.pipeline_mode<synchronous>, transform_indices = @transform_7, window_bounds = array<i64: 64, 1>}, {transform_indices = @transform_8, window_bounds = array<i64: 1, 1>}, {transform_indices = @transform_9, window_bounds = array<i64: 1, 128>}]} {
    %c0 = arith.constant 0 : index
    %c0_0 = arith.constant 0 : index
    %0 = vector.load %arg3[%c0, %c0_0] : memref<64x16xbf16, #tpu.memory_space<vmem>>, vector<64x16xbf16>
    %c0_1 = arith.constant 0 : index
    %c0_2 = arith.constant 0 : index
    %1 = vector.load %arg1[%c0_1, %c0_2] : memref<16x128xbf16, #tpu.memory_space<vmem>>, vector<16x128xbf16>
    %cst = arith.constant dense<0.000000e+00> : vector<64x128xf32>
    %2 = tpu.matmul %0, %1, %cst {dimension_numbers = #tpu.dot_dimension_numbers<[1], [0], [0], [1], [0, 0, 1, 1], [], []>} : vector<64x16xbf16>, vector<16x128xbf16>, vector<64x128xf32> -> vector<64x128xf32>
    %c0_3 = arith.constant 0 : index
    %c0_4 = arith.constant 0 : index
    %3 = vector.load %arg4[%c0_3, %c0_4] : memref<64x8xbf16, #tpu.memory_space<vmem>>, vector<64x8xbf16>
    %c0_5 = arith.constant 0 : index
    %c0_6 = arith.constant 0 : index
    %4 = vector.load %arg2[%c0_5, %c0_6] : memref<8x128xbf16, #tpu.memory_space<vmem>>, vector<8x128xbf16>
    %cst_7 = arith.constant dense<0.000000e+00> : vector<64x128xf32>
    %5 = tpu.matmul %3, %4, %cst_7 {dimension_numbers = #tpu.dot_dimension_numbers<[1], [0], [0], [1], [0, 0, 1, 1], [], []>} : vector<64x8xbf16>, vector<8x128xbf16>, vector<64x128xf32> -> vector<64x128xf32>
    %6 = arith.addf %2, %5 : vector<64x128xf32>
    %c0_8 = arith.constant 0 : index
    %c0_9 = arith.constant 0 : index
    %7 = vector.load %arg5[%c0_8, %c0_9] : memref<64x1xf32, #tpu.memory_space<vmem>>, vector<64x1xf32>
    %8 = vector.broadcast %7 : vector<64x1xf32> to vector<64x128xf32>
    %9 = arith.addf %6, %8 : vector<64x128xf32>
    %cst_10 = arith.constant 0.000000e+00 : f32
    %10 = vector.broadcast %cst_10 : f32 to vector<64x128xf32>
    %11 = arith.maximumf %9, %10 : vector<64x128xf32>
    %c0_11 = arith.constant 0 : index
    %c0_12 = arith.constant 0 : index
    %12 = vector.load %arg6[%c0_11, %c0_12] : memref<64x64xbf16, #tpu.memory_space<vmem>>, vector<64x64xbf16>
    %13 = arith.truncf %11 : vector<64x128xf32> to vector<64x128xbf16>
    %cst_13 = arith.constant dense<0.000000e+00> : vector<64x128xf32>
    %14 = tpu.matmul %12, %13, %cst_13 {dimension_numbers = #tpu.dot_dimension_numbers<[1], [0], [0], [1], [0, 0, 1, 1], [], []>} : vector<64x64xbf16>, vector<64x128xbf16>, vector<64x128xf32> -> vector<64x128xf32>
    %c0_14 = arith.constant 0 : index
    %c0_15 = arith.constant 0 : index
    %15 = vector.load %arg7[%c0_14, %c0_15] : memref<64x1xf32, #tpu.memory_space<vmem>>, vector<64x1xf32>
    %16 = vector.broadcast %15 : vector<64x1xf32> to vector<64x128xf32>
    %17 = arith.addf %14, %16 : vector<64x128xf32>
    %cst_16 = arith.constant 0.000000e+00 : f32
    %18 = vector.broadcast %cst_16 : f32 to vector<64x128xf32>
    %19 = arith.maximumf %17, %18 : vector<64x128xf32>
    %c0_17 = arith.constant 0 : index
    %c0_18 = arith.constant 0 : index
    %20 = vector.load %arg8[%c0_17, %c0_18] : memref<64x1xf32, #tpu.memory_space<vmem>>, vector<64x1xf32>
    %21 = vector.broadcast %20 : vector<64x1xf32> to vector<64x128xf32>
    %22 = arith.mulf %19, %21 : vector<64x128xf32>
    %cst_19 = arith.constant dense<0.000000e+00> : vector<128xf32>
    %23 = vector.multi_reduction <add>, %22, %cst_19 [0] : vector<64x128xf32> to vector<128xf32>
    %24 = vector.shape_cast %23 : vector<128xf32> to vector<1x128xf32>
    %c0_20 = arith.constant 0 : index
    %c0_21 = arith.constant 0 : index
    %25 = memref.load %arg9[%c0_20, %c0_21] : memref<1x1xf32, #tpu.memory_space<smem>>
    %26 = vector.broadcast %25 : f32 to vector<1x128xf32>
    %27 = arith.addf %24, %26 : vector<1x128xf32>
    %c0_22 = arith.constant 0 : index
    %c0_23 = arith.constant 0 : index
    %28 = vector.load %arg10[%c0_22, %c0_23] : memref<1x128xf32, #tpu.memory_space<vmem>>, vector<1x128xf32>
    tpu.vector_store %arg10[%c0_22, %c0_23], %27 {strides = array<i32>} : memref<1x128xf32, #tpu.memory_space<vmem>>, vector<1x128xf32>,
    return
  }
  func.func @transform_0(%arg0: i32) -> (i32, i32) {
    %c0_i32 = arith.constant 0 : i32
    %c0_i32_0 = arith.constant 0 : i32
    return %c0_i32, %arg0 : i32, i32
  }
  func.func @transform_1(%arg0: i32) -> (i32, i32) {
    %c0_i32 = arith.constant 0 : i32
    %c0_i32_0 = arith.constant 0 : i32
    return %c0_i32, %arg0 : i32, i32
  }
  func.func @transform_2(%arg0: i32) -> (i32, i32) {
    %c0_i32 = arith.constant 0 : i32
    %c0_i32_0 = arith.constant 0 : i32
    %c0_i32_1 = arith.constant 0 : i32
    return %c0_i32, %c0_i32_0 : i32, i32
  }
  func.func @transform_3(%arg0: i32) -> (i32, i32) {
    %c0_i32 = arith.constant 0 : i32
    %c0_i32_0 = arith.constant 0 : i32
    %c0_i32_1 = arith.constant 0 : i32
    return %c0_i32, %c0_i32_0 : i32, i32
  }
  func.func @transform_4(%arg0: i32) -> (i32, i32) {
    %c0_i32 = arith.constant 0 : i32
    %c0_i32_0 = arith.constant 0 : i32
    %c0_i32_1 = arith.constant 0 : i32
    return %c0_i32, %c0_i32_0 : i32, i32
  }
  func.func @transform_5(%arg0: i32) -> (i32, i32) {
    %c0_i32 = arith.constant 0 : i32
    %c0_i32_0 = arith.constant 0 : i32
    %c0_i32_1 = arith.constant 0 : i32
    return %c0_i32, %c0_i32_0 : i32, i32
  }
  func.func @transform_6(%arg0: i32) -> (i32, i32) {
    %c0_i32 = arith.constant 0 : i32
    %c0_i32_0 = arith.constant 0 : i32
    %c0_i32_1 = arith.constant 0 : i32
    return %c0_i32, %c0_i32_0 : i32, i32
  }
  func.func @transform_7(%arg0: i32) -> (i32, i32) {
    %c0_i32 = arith.constant 0 : i32
    %c0_i32_0 = arith.constant 0 : i32
    %c0_i32_1 = arith.constant 0 : i32
    return %c0_i32, %c0_i32_0 : i32, i32
  }
  func.func @transform_8(%arg0: i32) -> (i32, i32) {
    %c0_i32 = arith.constant 0 : i32
    %c0_i32_0 = arith.constant 0 : i32
    %c0_i32_1 = arith.constant 0 : i32
    return %c0_i32, %c0_i32_0 : i32, i32
  }
  func.func @transform_9(%arg0: i32) -> (i32, i32) {
    %c0_i32 = arith.constant 0 : i32
    %c0_i32_0 = arith.constant 0 : i32
    return %c0_i32, %arg0 : i32, i32
  }
}

</mosaic_0001>

<bundles_post_ra>
// kernel: critic_forward.1
= control target key start
LH: loop header
LB: loop body
LE: loop exit
PB: predicated region body
PF: predicated region fallthrough
CT: control target
= control target key end

     0   :  { %vm86_vm0 = vcmask 1043456   ;;  %vm73_vm1 = vcmask 64512   ;;  %v670_v1 = vmov 0   ;;  %vm181_vm2 = vcmask 130048   ;;  %s853_s1 = inlined_call_operand.vmem [shape: bf16[8,128], index: 1, kind: input, shape index: {}]   ;;  %s854_s3 = inlined_call_operand.vmem [shape: bf16[64,8], index: 3, kind: input, shape index: {}]   ;;  %s855_s0 = inlined_call_operand.vmem [shape: bf16[16,128], index: 0, kind: input, shape index: {}]   ;;  %s856_s2 = inlined_call_operand.vmem [shape: bf16[64,16], index: 2, kind: input, shape index: {}]   ;;  %s857_s4 = inlined_call_operand.vmem [shape: f32[64,1], index: 4, kind: input, shape index: {}]   ;;  %s858_s6 = inlined_call_operand.vmem [shape: f32[64,1], index: 6, kind: input, shape index: {}]   ;;  %s859_s7 = inlined_call_operand.vmem [shape: f32[64,1], index: 7, kind: input, shape index: {}]   ;;  %s860_s5 = inlined_call_operand.vmem [shape: bf16[64,64], index: 5, kind: input, shape index: {}]   ;;  %s861_s8 = inlined_call_operand.<no memory space> [shape: f32[1,1], index: 8, kind: input, shape index: {}]   ;;  %s862_s9 = inlined_call_operand.vmem [shape: f32[1,128], index: 9, kind: output, shape index: {}]  }
   0x1   :  { %v52_v0 = vld [vmem:[%s853_s1] sm:$0xf]  ;;  %655 = vset.pattern.permute.xlu0 %v670_v1  ;;  %656 = vset.pattern.permute.xlu1 %v670_v1  ;;  %v658_v4 = vld [vmem:[%s854_s3 + $0x8] sm:$0xff]   ;;  %v660_v6 = vld [vmem:[%s854_s3 + $0x10] sm:$0xff]   ;;  %vm403_vm3 = vcmask 523264  }
   0x2   :  { %653 = vmatprep.subr.msk.bf16.mxu0 %vm86_vm0, %v52_v0  ;;  %v88_v2 = vsel %vm86_vm0, %v52_v0, 0  ;;  %v657_v3 = vld [vmem:[%s854_s3] sm:$0xff]   ;;  %v661_v7 = vld [vmem:[%s854_s3 + $0x18] sm:$0xff]   ;;  %v261_v9 = vld [vmem:[%s857_s4 + $0x10] sm:$0xff] }
   0x3   :  { %610 = vmatpush3.bf16.msra.mxu0 %v88_v2  ;;  %611 = vmatprep.mubr.msk.bf16.mxu0 %vm73_vm1, %v657_v3  ;;  %v659_v5 = vld [vmem:[%s855_s0] sm:$0xff]   ;;  %v260_v11 = vld [vmem:[%s857_s4 + $0x8] sm:$0xff]  ;;  %v262_v12 = vld [vmem:[%s857_s4 + $0x18] sm:$0xff] }
   0x4   :  { %619 = vmatprep.subr.bf16.mxu0 %v659_v5  ;;  %v259_v8 = vld [vmem:[%s857_s4] sm:$0xff]  ;;  %279 = vperm.xlu1 %656, %v261_v9   ;;  %v264_v14 = vld [vmem:[%s857_s4 + $0x28] sm:$0xff]  ;;  %v664_v16 = vld [vmem:[%s856_s2 + $0x10] sm:$0xff]  }
   0x5   :  { %v662_v10 = vld [vmem:[%s856_s2] sm:$0xff]   ;;  %269 = vperm.xlu0 %655, %v259_v8   ;;  %v663_v15 = vld [vmem:[%s856_s2 + $0x8] sm:$0xff]   ;;  %v265_v17 = vld [vmem:[%s857_s4 + $0x30] sm:$0xff] }
   0x6   :  { %612 = vmatmul.mubr.msk.bf16.vlgmr.msra.gmra.mrb[0].mxu0 %vm73_vm1, %v658_v4  ;;  %v263_v13 = vld [vmem:[%s857_s4 + $0x20] sm:$0xff]  ;;  %v266_v18 = vld [vmem:[%s857_s4 + $0x38] sm:$0xff]  ;;  %v336_v20 = vld [vmem:[%s858_s6 + $0x8] sm:$0xff] }
   0x7   :  { %620 = vmatpush3.bf16.msra.mxu0 %v659_v5  ;;  %615 = vmatprep.mubr.msk.bf16.mxu0 %vm73_vm1, %v660_v6  ;;  %v335_v19 = vld [vmem:[%s858_s6] sm:$0xff]  ;;  %v665_v21 = vld [vmem:[%s856_s2 + $0x18] sm:$0xff]   ;;  %v337_v22 = vld [vmem:[%s858_s6 + $0x10] sm:$0xff] }
   0x8   :  { %284 = vperm.xlu1 %656, %v262_v12   ;;  %v338_v23 = vld [vmem:[%s858_s6 + $0x18] sm:$0xff]  ;;  %v489_v24 = vld [vmem:[%s859_s7] sm:$0xff]  ;;  %v490_v25 = vld [vmem:[%s859_s7 + $0x8] sm:$0xff] }
   0x9   :  { %274 = vperm.xlu0 %655, %v260_v11   ;;  %v339_v26 = vld [vmem:[%s858_s6 + $0x20] sm:$0xff]  ;;  %v491_v27 = vld [vmem:[%s859_s7 + $0x10] sm:$0xff]  ;;  %v340_v28 = vld [vmem:[%s858_s6 + $0x28] sm:$0xff] }
   0xa   :  { %v492_v29 = vld [vmem:[%s859_s7 + $0x18] sm:$0xff]  ;;  %v341_v30 = vld [vmem:[%s858_s6 + $0x30] sm:$0xff]  ;;  %v493_v31 = vld [vmem:[%s859_s7 + $0x20] sm:$0xff] }
   0xb   :  { %v342_v32 = vld [vmem:[%s858_s6 + $0x38] sm:$0xff]  ;;  %v494_v33 = vld [vmem:[%s859_s7 + $0x28] sm:$0xff]  ;;  %v495_v34 = vld [vmem:[%s859_s7 + $0x30] sm:$0xff] }
   0xc   :  { %294 = vperm.xlu1 %656, %v264_v14   ;;  %v496_v35 = vld [vmem:[%s859_s7 + $0x38] sm:$0xff]  ;;  %v666_v36 = vld [vmem:[%s860_s5] sm:$0xff]   ;;  %v667_v9 = vld [vmem:[%s860_s5 + $0x8] sm:$0xff]  }
   0xd   :  { %289 = vperm.xlu0 %655, %v263_v13   ;;  %637 = vmatprep.mubr.msk.bf16.mxu1 %vm403_vm3, %v666_v36  ;;  %v669_v11 = vld [vmem:[%s860_s5 + $0x18] sm:$0xff]  }
   0xe   :  { %616 = vmatmul.mubr.msk.bf16.gmra.mrb[4].mxu0 %vm73_vm1, %v661_v7 }
   0xf   :  { %621 = vmatprep.mubr.msk.bf16.mxu0 %vm181_vm2, %v662_v10  ;;  %v668_v10 = vld [vmem:[%s860_s5 + $0x10] sm:$0xff]  }
  0x10   :  { %304 = vperm.xlu1 %656, %v266_v18  }
  0x11   :  { %299 = vperm.xlu0 %655, %v265_v17  }
  0x14   :  { %350 = vperm.xlu1 %656, %v336_v20  }
  0x15   :  { %345 = vperm.xlu0 %655, %v335_v19  }
  0x16   :  { %622 = vmatmul.mubr.msk.bf16.vlgmr.msra.gmra.mrb[0].mxu0 %vm181_vm2, %v663_v15 }
  0x17   :  { %625 = vmatprep.mubr.msk.bf16.mxu0 %vm181_vm2, %v664_v16 }
  0x18   :  { %360 = vperm.xlu1 %656, %v338_v23  }
  0x19   :  { %355 = vperm.xlu0 %655, %v337_v22  }
  0x1c   :  { %504 = vperm.xlu1 %656, %v490_v25  }
  0x1d   :  { %499 = vperm.xlu0 %655, %v489_v24  }
  0x1e   :  { %626 = vmatmul.mubr.msk.bf16.gmra.mrb[4].mxu0 %vm181_vm2, %v665_v21 }
  0x20   :  { %509 = vperm.xlu1 %656, %v491_v27  }
  0x21   :  { %365 = vperm.xlu0 %655, %v339_v26  }
  0x24   :  { %514 = vperm.xlu1 %656, %v492_v29  }
  0x25   :  { %370 = vperm.xlu0 %655, %v340_v28  }
  0x28   :  { %519 = vperm.xlu1 %656, %v493_v31  }
  0x29   :  { %375 = vperm.xlu0 %655, %v341_v30  }
  0x2c   :  { %524 = vperm.xlu1 %656, %v494_v33  }
  0x2d   :  { %380 = vperm.xlu0 %655, %v342_v32  }
  0x30   :  { %534 = vperm.xlu1 %656, %v496_v35  }
  0x31   :  { %529 = vperm.xlu0 %655, %v495_v34  }
  0x83   :  { %v280_v38 = vpop.permute.xlu1 %279 }
  0x84   :  { %v270_v37 = vpop.permute.xlu0 %269 }
  0x87   :  { %v285_v40 = vpop.permute.xlu1 %284 }
  0x88   :  { %v275_v39 = vpop.permute.xlu0 %274 }
  0x8b   :  { %v295_v49 = vpop.permute.xlu1 %294 }
  0x8c   :  { %v290_v44 = vpop.permute.xlu0 %289 }
  0x8f   :  { %v305_v61 = vpop.permute.xlu1 %304 }
  0x90   :  { %v300_v56 = vpop.permute.xlu0 %299 }
  0x93   :  { %v351_v13 = vpop.permute.xlu1 %350 }
  0x94   :  { %v346_v12 = vpop.permute.xlu0 %345 }
  0x97   :  { %v361_v15 = vpop.permute.xlu1 %360 }
  0x98   :  { %v356_v14 = vpop.permute.xlu0 %355 }
  0x9b   :  { %v505_v17 = vpop.permute.xlu1 %504 }
  0x9c   :  { %v500_v16 = vpop.permute.xlu0 %499 }
  0x9f   :  { %v510_v19 = vpop.permute.xlu1 %509 }
  0xa0   :  { %v366_v18 = vpop.permute.xlu0 %365 }
  0xa3   :  { %v515_v22 = vpop.permute.xlu1 %514 }
  0xa4   :  { %v371_v20 = vpop.permute.xlu0 %370 }
  0xa7   :  { %v520_v34 = vpop.permute.xlu1 %519 }
  0xa8   :  { %v376_v31 = vpop.permute.xlu0 %375 }
  0xe9   :  { %v623_v41 = vpop.f32.mrb[0].mxu0 }
  0xea   :  { %v309_v42 = vadd.f32 %v623_v41, %v280_v38  ;;  %v228_v43 = vpop.f32.mrb[1].mxu0 }
  0xeb   :  { %v307_v45 = vadd.f32 %v270_v37, %v228_v43  ;;  %v624_v46 = vpop.f32.mrb[2].mxu0 }
  0xec   :  { %v310_v47 = vadd.f32 %v624_v46, %v285_v40  ;;  %v231_v48 = vpop.f32.mrb[3].mxu0  ;;  %v317_v51 = vmax.f32 %v309_v42, 0.0 }
  0xed   :  { %v308_v50 = vadd.f32 %v275_v39, %v231_v48  ;;  %v315_v53 = vmax.f32 %v307_v45, 0.0  ;;  %v381_v45 = vpop.permute.xlu0 %380 }
  0xee   :  { %v318_v52 = vmax.f32 %v310_v47, 0.0 }
  0xef   :  { %v316_v54 = vmax.f32 %v308_v50, 0.0 }
  0xf0   :  { %v332_v55 = vpack.c.bf16 %v318_v52, %v317_v51  ;;  %v525_v52 = vpop.permute.xlu1 %524 }
  0xf1   :  { %v627_v57 = vpop.f32.mrb[4].mxu0  ;;  %v331_v58 = vpack.c.bf16 %v316_v54, %v315_v53 }
  0xf2   :  { %v313_v59 = vadd.f32 %v627_v57, %v300_v56  ;;  %v244_v60 = vpop.f32.mrb[5].mxu0 }
  0xf3   :  { %v311_v62 = vadd.f32 %v290_v44, %v244_v60  ;;  %v628_v63 = vpop.f32.mrb[6].mxu0  ;;  %629 = vmatprep.subr.bf16.mxu1 %v331_v58  ;;  %v530_v60 = vpop.permute.xlu0 %529 }
  0xf4   :  { %v314_v0 = vadd.f32 %v628_v63, %v305_v61  ;;  %v247_v1 = vpop.f32.mrb[7].mxu0  ;;  %630 = vmatpush3.bf16.msra.mxu1 %v331_v58  ;;  %v321_v3 = vmax.f32 %v313_v59, 0.0  ;;  %v535_v63 = vpop.permute.xlu1 %534 }
  0xf5   :  { %v312_v2 = vadd.f32 %v295_v49, %v247_v1  ;;  %631 = vmatprep.subr.bf16.mxu1 %v332_v55  ;;  %v319_v5 = vmax.f32 %v311_v62, 0.0 }
  0xf6   :  { %v322_v4 = vmax.f32 %v314_v0, 0.0 }
  0xf7   :  { %v320_v6 = vmax.f32 %v312_v2, 0.0 }
  0xf8   :  { %v334_v7 = vpack.c.bf16 %v322_v4, %v321_v3  ;;  %632 = vmatpush3.bf16.msra.mxu1 %v332_v55 }
  0xf9   :  { %v333_v8 = vpack.c.bf16 %v320_v6, %v319_v5 }
  0xfb   :  { %633 = vmatprep.subr.bf16.mxu1 %v333_v8 }
  0xfc   :  { %634 = vmatpush3.bf16.msra.mxu1 %v333_v8  ;;  %v559_v8 = vstv %s861_s8 }
  0xfd   :  { %635 = vmatprep.subr.bf16.mxu1 %v334_v7 }
 0x100   :  { %636 = vmatpush3.bf16.msra.mxu1 %v334_v7 }
 0x103   :  { %638 = vmatmul.mubr.msk.bf16.vlgmr.msra.gmra.mrb[0].mxu1 %vm403_vm3, %v667_v9 }
 0x104   :  { %641 = vmatprep.mubr.msk.bf16.mxu1 %vm403_vm3, %v668_v10 }
 0x10b   :  { %642 = vmatmul.mubr.msk.bf16.gmra.mrb[4].mxu1 %vm403_vm3, %v669_v11 }
 0x1d6   :  { %v639_v21 = vpop.f32.mrb[0].mxu1 }
 0x1d7   :  { %v450_v23 = vpop.f32.mrb[1].mxu1  ;;  %v459_v24 = vadd.f32 %v639_v21, %v356_v14 }
 0x1d8   :  { %v451_v25 = vadd.f32 %v450_v23, %v346_v12  ;;  %v640_v26 = vpop.f32.mrb[2].mxu1 }
 0x1d9   :  { %v462_v27 = vadd.f32 %v640_v26, %v361_v15  ;;  %v453_v28 = vpop.f32.mrb[3].mxu1  ;;  %v483_v32 = vmax.f32 %v459_v24, 0.0 }
 0x1da   :  { %v481_v29 = vmax.f32 %v451_v25, 0.0  ;;  %v454_v30 = vadd.f32 %v453_v28, %v351_v13 }
 0x1db   :  { %v484_v35 = vmax.f32 %v462_v27, 0.0  ;;  %v539_v40 = vmul.f32 %v510_v19, %v483_v32 }
 0x1dc   :  { %v482_v33 = vmax.f32 %v454_v30, 0.0  ;;  %v537_v36 = vmul.f32 %v500_v16, %v481_v29 }
 0x1dd   :  { %v540_v46 = vmul.f32 %v515_v22, %v484_v35 }
 0x1de   :  { %v538_v37 = vmul.f32 %v505_v17, %v482_v33  ;;  %v643_v38 = vpop.f32.mrb[4].mxu1 }
 0x1df   :  { %v466_v39 = vpop.f32.mrb[5].mxu1  ;;  %v475_v42 = vadd.f32 %v643_v38, %v376_v31 }
 0x1e0   :  { %v545_v41 = vadd.f32 %v538_v37, %v537_v36  ;;  %v467_v43 = vadd.f32 %v466_v39, %v366_v18  ;;  %v644_v44 = vpop.f32.mrb[6].mxu1 }
 0x1e1   :  { %v469_v47 = vpop.f32.mrb[7].mxu1  ;;  %v478_v50 = vadd.f32 %v644_v44, %v381_v45  ;;  %v487_v53 = vmax.f32 %v475_v42, 0.0 }
 0x1e2   :  { %v546_v48 = vadd.f32 %v545_v41, %v539_v40  ;;  %v485_v49 = vmax.f32 %v467_v43, 0.0  ;;  %v470_v51 = vadd.f32 %v469_v47, %v371_v20 }
 0x1e3   :  { %v488_v58 = vmax.f32 %v478_v50, 0.0  ;;  %v543_v61 = vmul.f32 %v530_v60, %v487_v53 }
 0x1e4   :  { %v541_v54 = vmul.f32 %v520_v34, %v485_v49  ;;  %v547_v55 = vadd.f32 %v546_v48, %v540_v46  ;;  %v486_v56 = vmax.f32 %v470_v51, 0.0 }
 0x1e5   :  { %v544_v0 = vmul.f32 %v535_v63, %v488_v58 }
 0x1e6   :  { %v548_v57 = vadd.f32 %v547_v55, %v541_v54  ;;  %v542_v59 = vmul.f32 %v525_v52, %v486_v56 }
 0x1e8   :  { %v549_v62 = vadd.f32 %v548_v57, %v542_v59 }
 0x1ea   :  { %v550_v1 = vadd.f32 %v549_v62, %v543_v61 }
 0x1ec   :  { %v551_v2 = vadd.f32 %v550_v1, %v544_v0 }
 0x1ee   :  { %v552_v3 = vrot.slane %v551_v2, 4 }
 0x1f0   :  { %v553_v4 = vadd.f32 %v552_v3, %v551_v2 }
 0x1f2   :  { %v554_v5 = vrot.slane %v553_v4, 2 }
 0x1f4   :  { %v555_v6 = vadd.f32 %v554_v5, %v553_v4 }
 0x1f6   :  { %v556_v7 = vrot.slane %v555_v6, 1 }
 0x1f8   :  { %v557_v9 = vadd.f32 %v556_v7, %v555_v6 }
 0x1fa   :  { %v560_v10 = vadd.f32 %v559_v8, %v557_v9 }
 0x1fc   :  { %561 = vst [vmem:[%s862_s9] sm:$0x1] %v560_v10 }

</bundles_post_ra>
